<compile_context>
chip_gen: v5e
topology: v5e:2x2
jax: 0.10.0
libtpu: 0.0.40
codegen_flags: <defaults>
</compile_context>

<pallas_src>
import functools

import jax
import jax.numpy as jnp
from jax.experimental import pallas as pl
from jax.experimental.pallas import tpu as pltpu


def _round_up(x, m):
    return ((x + m - 1) // m) * m


def _movie_user_kernel(field_dim, out_pad, idx_ref, tg_ref, ta_ref, to_ref,
                       tz_ref, out_ref):
    """idx_ref: (tile_m, 4) int32; t*_ref: (vocab_k_pad, D) f32 tables;
    out_ref: (tile_m, out_dim_pad) f32."""
    rows = out_ref.shape[0]

    # Only needed when 4*D is not already a multiple of 128 (trace-time branch).
    if out_pad:
        out_ref[...] = jnp.zeros_like(out_ref)

    for k, t_ref in enumerate((tg_ref, ta_ref, to_ref, tz_ref)):
        vk = t_ref.shape[0]                                   # padded to 128*
        idx_k = idx_ref[:, k:k + 1]                           # (rows, 1) int32
        lanes = jax.lax.broadcasted_iota(jnp.int32, (rows, vk), 1)
        hot = (lanes == idx_k).astype(jnp.float32)            # exact 0/1
        emb = jnp.dot(hot, t_ref[...],
                      preferred_element_type=jnp.float32)     # (rows, D)
        out_ref[:, k * field_dim:(k + 1) * field_dim] = emb.astype(out_ref.dtype)


def movie_user_forward(gender_idx, age_idx, occupation_idx, area_idx, params,
                       *, max_tile_m=256):
    """Indices: int arrays of shape (N,). Returns (N, 4*embedding_dim) f32."""
    tables = [params["gender"], params["age"], params["occupation"], params["area"]]
    D = tables[0].shape[1]
    out_dim = len(tables) * D
    out_dim_pad = _round_up(out_dim, 128)   # lane-dense output (128 when D=32)
    N = gender_idx.shape[0]

    if N == 0:                              # degenerate grid guard
        return jnp.zeros((0, out_dim), jnp.float32)

    # Row tiling policy (see header comment).
    if N <= 32:
        tile_m = _round_up(N, 8)                     # one small, aligned block
    elif N <= 2 * max_tile_m:
        tile_m = _round_up(-(-N // 2), 8)            # exactly 2 blocks (v7x TCs)
    else:
        tile_m = max_tile_m
    n_pad = _round_up(N, tile_m)

    # Fuse the four index vectors into one (N, 4) int32 array -> one DMA/step.
    idx = jnp.stack(
        [jnp.asarray(i, jnp.int32).reshape(-1)
         for i in (gender_idx, age_idx, occupation_idx, area_idx)],
        axis=1)
    if n_pad != N:
        idx = jnp.pad(idx, ((0, n_pad - N), (0, 0)))          # index 0 is valid

    # Pad each vocab up to a multiple of 128 lanes (rows of zeros; never hit).
    padded_tables = []
    for t in tables:
        v = t.shape[0]
        vp = _round_up(v, 128)
        t = t.astype(jnp.float32)
        if vp != v:
            t = jnp.pad(t, ((0, vp - v), (0, 0)))
        padded_tables.append(t)
    total_vocab_pad = sum(t.shape[0] for t in padded_tables)

    grid = (n_pad // tile_m,)
    idx_spec = pl.BlockSpec((tile_m, 4), lambda i: (i, 0))
    tab_specs = [pl.BlockSpec(t.shape, lambda i: (0, 0)) for t in padded_tables]
    out_spec = pl.BlockSpec((tile_m, out_dim_pad), lambda i: (i, 0))

    cost = pl.CostEstimate(
        flops=2 * n_pad * total_vocab_pad * D,
        transcendentals=0,
        bytes_accessed=(n_pad * 4 * 4                              # fused idx
                        + sum(t.size for t in padded_tables) * 4   # raw tables
                        + n_pad * out_dim_pad * 4),                # output
    )

    out = pl.pallas_call(
        functools.partial(_movie_user_kernel, D, out_dim_pad - out_dim),
        out_shape=jax.ShapeDtypeStruct((n_pad, out_dim_pad), jnp.float32),
        grid_spec=pl.GridSpec(
            grid=grid,
            in_specs=[idx_spec] + tab_specs,
            out_specs=out_spec,
        ),
        compiler_params=pltpu.CompilerParams(
            dimension_semantics=("parallel",),
        ),
        cost_estimate=cost,
    )(idx, *padded_tables)

    return out[:N, :out_dim]


def reference_forward(gender_idx, age_idx, occupation_idx, area_idx, params):
    """Plain-JAX reference mirroring the PyTorch forward."""
    return jnp.concatenate(
        [params["gender"][gender_idx],
         params["age"][age_idx],
         params["occupation"][occupation_idx],
         params["area"][area_idx]],
        axis=1,
    )


def init_params(key, config):
    kg, ka, ko, kz = jax.random.split(key, 4)
    D = config["embedding_dim"]
    s = 0.1
    return {
        "gender": s * jax.random.normal(kg, (config["num_gender"], D), jnp.float32),
        "age": s * jax.random.normal(ka, (config["num_age"], D), jnp.float32),
        "occupation": s * jax.random.normal(ko, (config["num_occupation"], D), jnp.float32),
        "area": s * jax.random.normal(kz, (config["num_zipcode"], D), jnp.float32),
    }


if __name__ == "__main__":
    # Small MovieLens-like config (zipcode vocab scaled down for the demo).
    config = dict(num_gender=2, num_age=7, num_occupation=21, num_zipcode=200,
                  embedding_dim=32)
    N = 64

    key = jax.random.PRNGKey(0)
    kp, kg, ka, ko, kz = jax.random.split(key, 5)
    params = init_params(kp, config)
    gender_idx = jax.random.randint(kg, (N,), 0, config["num_gender"], jnp.int32)
    age_idx = jax.random.randint(ka, (N,), 0, config["num_age"], jnp.int32)
    occupation_idx = jax.random.randint(ko, (N,), 0, config["num_occupation"], jnp.int32)
    area_idx = jax.random.randint(kz, (N,), 0, config["num_zipcode"], jnp.int32)

    y = movie_user_forward(gender_idx, age_idx, occupation_idx, area_idx, params)
    y = jax.block_until_ready(y)

    y_ref = reference_forward(gender_idx, age_idx, occupation_idx, area_idx, params)
    assert y.shape == (N, 4 * config["embedding_dim"])
    assert jnp.allclose(y, y_ref, atol=1e-6, rtol=1e-6), "mismatch vs reference"

    print("KERNEL_OK")
</pallas_src>

<mosaic_0001>
module attributes {stable_mosaic.version = 11 : i64} {
  func.func @_movie_user_kernel(%arg0: i32, %arg1: memref<32x4xi32, #tpu.memory_space<vmem>>, %arg2: memref<128x32xf32, #tpu.memory_space<vmem>>, %arg3: memref<128x32xf32, #tpu.memory_space<vmem>>, %arg4: memref<128x32xf32, #tpu.memory_space<vmem>>, %arg5: memref<256x32xf32, #tpu.memory_space<vmem>>, %arg6: memref<32x128xf32, #tpu.memory_space<vmem>>) attributes {dimension_semantics = [#tpu.dimension_semantics<parallel>], iteration_bounds = array<i64: 2>, scalar_prefetch = 0 : i64, scratch_operands = 0 : i64, tpu.core_type = #tpu.core_type<tc>, window_params = [{transform_indices = @transform_0, window_bounds = array<i64: 32, 4>}, {pipeline_mode = #tpu.pipeline_mode<synchronous>, transform_indices = @transform_1, window_bounds = array<i64: 128, 32>}, {pipeline_mode = #tpu.pipeline_mode<synchronous>, transform_indices = @transform_2, window_bounds = array<i64: 128, 32>}, {pipeline_mode = #tpu.pipeline_mode<synchronous>, transform_indices = @transform_3, window_bounds = array<i64: 128, 32>}, {pipeline_mode = #tpu.pipeline_mode<synchronous>, transform_indices = @transform_4, window_bounds = array<i64: 256, 32>}, {transform_indices = @transform_5, window_bounds = array<i64: 32, 128>}]} {
    %c0 = arith.constant 0 : index
    %c0_0 = arith.constant 0 : index
    %0 = vector.load %arg1[%c0, %c0_0] : memref<32x4xi32, #tpu.memory_space<vmem>>, vector<32x1xi32>
    %1 = tpu.iota {dimensions = array<i32: 1>} : vector<32x128xi32>
    %2 = vector.broadcast %0 : vector<32x1xi32> to vector<32x128xi32>
    %3 = arith.cmpi eq, %1, %2 : vector<32x128xi32>
    %4 = arith.extui %3 : vector<32x128xi1> to vector<32x128xi32>
    %5 = arith.sitofp %4 : vector<32x128xi32> to vector<32x128xf32>
    %c0_1 = arith.constant 0 : index
    %c0_2 = arith.constant 0 : index
    %6 = vector.load %arg2[%c0_1, %c0_2] : memref<128x32xf32, #tpu.memory_space<vmem>>, vector<128x32xf32>
    %cst = arith.constant dense<0.000000e+00> : vector<32x32xf32>
    %7 = tpu.matmul %5, %6, %cst {dimension_numbers = #tpu.dot_dimension_numbers<[1], [0], [0], [1], [0, 0, 1, 1], [], []>} : vector<32x128xf32>, vector<128x32xf32>, vector<32x32xf32> -> vector<32x32xf32>
    %c0_3 = arith.constant 0 : index
    %c0_4 = arith.constant 0 : index
    %8 = vector.load %arg6[%c0_3, %c0_4] : memref<32x128xf32, #tpu.memory_space<vmem>>, vector<32x32xf32>
    tpu.vector_store %arg6[%c0_3, %c0_4], %7 {strides = array<i32>} : memref<32x128xf32, #tpu.memory_space<vmem>>, vector<32x32xf32>,
    %c0_5 = arith.constant 0 : index
    %c1 = arith.constant 1 : index
    %9 = vector.load %arg1[%c0_5, %c1] : memref<32x4xi32, #tpu.memory_space<vmem>>, vector<32x1xi32>
    %10 = tpu.iota {dimensions = array<i32: 1>} : vector<32x128xi32>
    %11 = vector.broadcast %9 : vector<32x1xi32> to vector<32x128xi32>
    %12 = arith.cmpi eq, %10, %11 : vector<32x128xi32>
    %13 = arith.extui %12 : vector<32x128xi1> to vector<32x128xi32>
    %14 = arith.sitofp %13 : vector<32x128xi32> to vector<32x128xf32>
    %c0_6 = arith.constant 0 : index
    %c0_7 = arith.constant 0 : index
    %15 = vector.load %arg3[%c0_6, %c0_7] : memref<128x32xf32, #tpu.memory_space<vmem>>, vector<128x32xf32>
    %cst_8 = arith.constant dense<0.000000e+00> : vector<32x32xf32>
    %16 = tpu.matmul %14, %15, %cst_8 {dimension_numbers = #tpu.dot_dimension_numbers<[1], [0], [0], [1], [0, 0, 1, 1], [], []>} : vector<32x128xf32>, vector<128x32xf32>, vector<32x32xf32> -> vector<32x32xf32>
    %c0_9 = arith.constant 0 : index
    %c32 = arith.constant 32 : index
    %17 = vector.load %arg6[%c0_9, %c32] : memref<32x128xf32, #tpu.memory_space<vmem>>, vector<32x32xf32>
    tpu.vector_store %arg6[%c0_9, %c32], %16 {strides = array<i32>} : memref<32x128xf32, #tpu.memory_space<vmem>>, vector<32x32xf32>,
    %c0_10 = arith.constant 0 : index
    %c2 = arith.constant 2 : index
    %18 = vector.load %arg1[%c0_10, %c2] : memref<32x4xi32, #tpu.memory_space<vmem>>, vector<32x1xi32>
    %19 = tpu.iota {dimensions = array<i32: 1>} : vector<32x128xi32>
    %20 = vector.broadcast %18 : vector<32x1xi32> to vector<32x128xi32>
    %21 = arith.cmpi eq, %19, %20 : vector<32x128xi32>
    %22 = arith.extui %21 : vector<32x128xi1> to vector<32x128xi32>
    %23 = arith.sitofp %22 : vector<32x128xi32> to vector<32x128xf32>
    %c0_11 = arith.constant 0 : index
    %c0_12 = arith.constant 0 : index
    %24 = vector.load %arg4[%c0_11, %c0_12] : memref<128x32xf32, #tpu.memory_space<vmem>>, vector<128x32xf32>
    %cst_13 = arith.constant dense<0.000000e+00> : vector<32x32xf32>
    %25 = tpu.matmul %23, %24, %cst_13 {dimension_numbers = #tpu.dot_dimension_numbers<[1], [0], [0], [1], [0, 0, 1, 1], [], []>} : vector<32x128xf32>, vector<128x32xf32>, vector<32x32xf32> -> vector<32x32xf32>
    %c0_14 = arith.constant 0 : index
    %c64 = arith.constant 64 : index
    %26 = vector.load %arg6[%c0_14, %c64] : memref<32x128xf32, #tpu.memory_space<vmem>>, vector<32x32xf32>
    tpu.vector_store %arg6[%c0_14, %c64], %25 {strides = array<i32>} : memref<32x128xf32, #tpu.memory_space<vmem>>, vector<32x32xf32>,
    %c0_15 = arith.constant 0 : index
    %c3 = arith.constant 3 : index
    %27 = vector.load %arg1[%c0_15, %c3] : memref<32x4xi32, #tpu.memory_space<vmem>>, vector<32x1xi32>
    %28 = tpu.iota {dimensions = array<i32: 1>} : vector<32x256xi32>
    %29 = vector.broadcast %27 : vector<32x1xi32> to vector<32x256xi32>
    %30 = arith.cmpi eq, %28, %29 : vector<32x256xi32>
    %31 = arith.extui %30 : vector<32x256xi1> to vector<32x256xi32>
    %32 = arith.sitofp %31 : vector<32x256xi32> to vector<32x256xf32>
    %c0_16 = arith.constant 0 : index
    %c0_17 = arith.constant 0 : index
    %33 = vector.load %arg5[%c0_16, %c0_17] : memref<256x32xf32, #tpu.memory_space<vmem>>, vector<256x32xf32>
    %cst_18 = arith.constant dense<0.000000e+00> : vector<32x32xf32>
    %34 = tpu.matmul %32, %33, %cst_18 {dimension_numbers = #tpu.dot_dimension_numbers<[1], [0], [0], [1], [0, 0, 1, 1], [], []>} : vector<32x256xf32>, vector<256x32xf32>, vector<32x32xf32> -> vector<32x32xf32>
    %c0_19 = arith.constant 0 : index
    %c96 = arith.constant 96 : index
    %35 = vector.load %arg6[%c0_19, %c96] : memref<32x128xf32, #tpu.memory_space<vmem>>, vector<32x32xf32>
    tpu.vector_store %arg6[%c0_19, %c96], %34 {strides = array<i32>} : memref<32x128xf32, #tpu.memory_space<vmem>>, vector<32x32xf32>,
    return
  }
  func.func @transform_0(%arg0: i32) -> (i32, i32) {
    %c0_i32 = arith.constant 0 : i32
    %c0_i32_0 = arith.constant 0 : i32
    return %arg0, %c0_i32 : i32, i32
  }
  func.func @transform_1(%arg0: i32) -> (i32, i32) {
    %c0_i32 = arith.constant 0 : i32
    %c0_i32_0 = arith.constant 0 : i32
    %c0_i32_1 = arith.constant 0 : i32
    return %c0_i32, %c0_i32_0 : i32, i32
  }
  func.func @transform_2(%arg0: i32) -> (i32, i32) {
    %c0_i32 = arith.constant 0 : i32
    %c0_i32_0 = arith.constant 0 : i32
    %c0_i32_1 = arith.constant 0 : i32
    return %c0_i32, %c0_i32_0 : i32, i32
  }
  func.func @transform_3(%arg0: i32) -> (i32, i32) {
    %c0_i32 = arith.constant 0 : i32
    %c0_i32_0 = arith.constant 0 : i32
    %c0_i32_1 = arith.constant 0 : i32
    return %c0_i32, %c0_i32_0 : i32, i32
  }
  func.func @transform_4(%arg0: i32) -> (i32, i32) {
    %c0_i32 = arith.constant 0 : i32
    %c0_i32_0 = arith.constant 0 : i32
    %c0_i32_1 = arith.constant 0 : i32
    return %c0_i32, %c0_i32_0 : i32, i32
  }
  func.func @transform_5(%arg0: i32) -> (i32, i32) {
    %c0_i32 = arith.constant 0 : i32
    %c0_i32_0 = arith.constant 0 : i32
    return %arg0, %c0_i32 : i32, i32
  }
}

</mosaic_0001>

<bundles_post_ra>
// kernel: tpu_custom_call.1
= control target key start
LH: loop header
LB: loop body
LE: loop exit
PB: predicated region body
PF: predicated region fallthrough
CT: control target
= control target key end

     0   :  { %10 = vsyncpa [#allocation3], 0  ;;  %s1435_s0 = inlined_call_operand.vmem [shape: s32[64,4], index: 0, kind: input, shape index: {}]   ;;  %s1436_s1 = inlined_call_operand.vmem [shape: f32[128,32], index: 1, kind: input, shape index: {}]   ;;  %s1437_s2 = inlined_call_operand.vmem [shape: f32[128,32], index: 2, kind: input, shape index: {}]   ;;  %s1438_s3 = inlined_call_operand.vmem [shape: f32[128,32], index: 3, kind: input, shape index: {}]   ;;  %s1439_s4 = inlined_call_operand.vmem [shape: f32[256,32], index: 4, kind: input, shape index: {}]   ;;  %s1440_s5 = inlined_call_operand.hbm [shape: f32[64,128], index: 5, kind: output, shape index: {}]  }
   0x1   :  { %12 = vsyncpa [#allocation3 + $0x1], 0  ;;  %s993_s18 = smov 0   ;;  %s995_s19 = smov 0  }
   0x2   :  { %s997_s20 = smov 0   ;;  %s999_s21 = smov 0  }
   0x3 LB: > { %s1014_s22 = sadd.s32 4294967295, %s951_s21   ;;  %s724_s23 = sadd.s32 4294967294, %s951_s21   ;;  %s951_s21 = sphi %s999_s21, %s1446_s21   ;;  %s947_s20 = sphi %s997_s20, %s1445_s20   ;;  %s943_s19 = sphi %s995_s19, %s1444_s19   ;;  %s939_s18 = sphi %s993_s18, %s1443_s18  }
   0x4   : > { %s1018_s24 = sadd.s32 1, %s951_s21   ;;  %s135_s25 = sadd.s32 1, %s947_s20 }
   0x5   : > { %s132_s26 = ssub.s32 %s951_s21, %s1018_s24  ;;  %p145_p0 = scmp.ne.s32.totalorder %s947_s20, %s943_s19 }
   0x6   : > { %p133_p1 = scmp.eq.s32.totalorder %s132_s26, 0  ;;  %p146_p2 = scmp.eq.s32.totalorder %s1014_s22, 1 }
   0x7   : > { %p151_p3 = scmp.ne.s32.totalorder %s943_s19, %s939_s18  ;;  %p152_p4 = scmp.eq.s32.totalorder %s724_s23, 1 }
   0x8   : > { %s1029_s27 = scalar_select %p133_p1, %s947_s20, %s135_s25  }
   0x9   : > { %p1031_p5 = por %p146_p2, %p145_p0  ;;  %p1035_p6 = por %p152_p4, %p151_p3 }
   0xa   : > { %p727_p7 = scmp.ge.s32.totalorder %s951_s21, 1  ;;  %p191_p8 = scmp.lt.s32.totalorder %s951_s21, 3 }
   0xc   : > { %p192_p9 = pnand %p727_p7, %p191_p8 }
   0xd   : > { %s729_s30 = sshll.u32 (!%p192_p9), %s1014_s22, 2  ;;  %s216_s11 = sand.u32 (!%p192_p9), 1, %s943_s19  }
   0xe   : > { %195 = sbr.rel (%p192_p9) target bundleno = 447 (0x1bf), region = 40  ;;  %p220_p10 = scmp.lt.s32.totalorder (!%p192_p9), %s729_s30, 7 }
   0xf   : > { %s728_s12 = sshll.u32 (!%p192_p9), %s216_s11, 5  ;;  %s958_s14 = smov (!%p192_p9), 32  }
  0x10   : > { %s1367_s13 = scalar_lea.vmem (!%p192_p9), [#allocation2], %s728_s12  ;;  %s959_s15 = smov (!%p192_p9), 64  }
  0x11   : > { %s960_s16 = smov (!%p192_p9), 96   ;;  %s776_s17 = sshll.u32 (!%p192_p9), %s1014_s22, 5 }
  0x12   : > { %s658_s26 = scalar_lea.hbm (!%p192_p9), %s1440_s5, %s776_s17  ;;  %s647_s22 = scalar_lea.sflag (!%p192_p9), [#allocation3], %s216_s11 }
  0x13   : > { %v953_v0 = vmov 3   ;;  %v954_v1 = vmov 0   ;;  %v955_v2 = vmov 2   ;;  %s1448_s30 = smov (!%p220_p10, %s729_s30), 7  ;;  %v956_v5 = vmov 1   ;;  %v271_v7 = vld [vmem:[%s1436_s1 + $0x78] sm:$0xff] }
  0x14   : > { %874 = vset.pattern.permute.xlu0 %v953_v0  ;;  %876 = vset.pattern.permute.xlu1 %v954_v1  ;;  %s730_s6 = sshll.u32 %s1448_s30, 3  ;;  %v270_v8 = vld [vmem:[%s1436_s1 + $0x70] sm:$0xff]  ;;  %v349_v9 = vld [vmem:[%s1437_s2 + $0x78] sm:$0xff]  ;;  %v269_v10 = vld [vmem:[%s1436_s1 + $0x68] sm:$0xff]  ;;  %s659_s30 = sshll.u32 %s1367_s13, 4  ;;  %s660_s30 = int_to_ptr.vmem [resolvable:$true] %s659_s30 }
  0x15   : > { %878 = vset.pattern.permute.xlu2 %v955_v2  ;;  %s1047_s9 = scalar_lea.vmem %s1435_s0, %s730_s6  ;;  %272 = vmatpush.msra.mxu0 %v271_v7  ;;  %v443_v11 = vld [vmem:[%s1438_s3 + $0x78] sm:$0xff]  ;;  %v268_v13 = vld [vmem:[%s1436_s1 + $0x60] sm:$0xff]  ;;  %v348_v14 = vld [vmem:[%s1437_s2 + $0x70] sm:$0xff]  ;;  %s661_s6 = sshll.u32 %s658_s26, 4  ;;  %s662_s6 = int_to_ptr.hbm [resolvable:$true] %s661_s6 }
  0x16   : > { %v494_v3 = vld [vmem:[%s1047_s9] sm:$0xff]  ;;  %v227_v4 = vld [vmem:[%s1047_s9 + $0x8] sm:$0xff]  ;;  %v1054_v6 = vld [vmem:[%s1047_s9 + $0x10] sm:$0xff]  ;;  %350 = vmatpush.msra.mxu1 %v349_v9  ;;  %444 = vmatpush.msra.mxu2 %v443_v11  ;;  %s903_s7 = sshra.s32 %s662_s6, 4  ;;  %s909_s12 = scalar_lea.hbm %s1440_s5, 64  ;;  %s904_s7 = int_to_ptr.hbm [resolvable:$true] %s903_s7 }
  0x17   : > { %500 = vperm.xlu0 %874, %v494_v3   ;;  %233 = vperm.xlu1 %876, %v494_v3   ;;  %v550_v12 = vld [vmem:[%s1439_s4 + $0x78] sm:$0xff]  ;;  %v442_v15 = vld [vmem:[%s1438_s3 + $0x70] sm:$0xff]  ;;  %v347_v18 = vld [vmem:[%s1437_s2 + $0x68] sm:$0xff]  ;;  %s905_s8 = scalar_lea.hbm %s904_s7, 32  ;;  %p910_p0 = scmp.lt.s32.totalorder %s904_s7, %s1440_s5 }
  0x18   : > { %408 = vperm.xlu2 %878, %v227_v4   ;;  %273 = vmatpush.msra.mxu0 %v270_v8  ;;  %v549_v16 = vld [vmem:[%s1439_s4 + $0x70] sm:$0xff]  ;;  %v267_v17 = vld [vmem:[%s1436_s1 + $0x58] sm:$0xff]  ;;  %v441_v19 = vld [vmem:[%s1438_s3 + $0x68] sm:$0xff]  ;;  %p906_p11 = scmp.ne.s32.totalorder %s904_s7, %s905_s8  ;;  %p911_p1 = scmp.lt.s32.totalorder %s909_s12, %s905_s8 }
  0x19   : > { %567 = vmatpush.msra.mxu3 %v550_v12  ;;  %351 = vmatpush.msra.mxu1 %v348_v14  ;;  %v1099_v20 = vld [vmem:[%s1047_s9 + $0x18] sm:$0xff]  ;;  %v266_v21 = vld [vmem:[%s1436_s1 + $0x50] sm:$0xff]  ;;  %v548_v22 = vld [vmem:[%s1439_s4 + $0x68] sm:$0xff] }
  0x1a   : > { %274 = vmatpush.msra.mxu0 %v269_v10  ;;  %445 = vmatpush.msra.mxu2 %v442_v15  ;;  %v265_v23 = vld [vmem:[%s1436_s1 + $0x48] sm:$0xff]  ;;  %v346_v24 = vld [vmem:[%s1437_s2 + $0x60] sm:$0xff]  ;;  %v345_v28 = vld [vmem:[%s1437_s2 + $0x58] sm:$0xff]  ;;  %p907_p12 = pnand %p906_p11, %p1031_p5  ;;  %p912_p2 = por %p911_p1, %p910_p0 }
  0x1b   : > { %568 = vmatpush.msra.mxu3 %v549_v16  ;;  %352 = vmatpush.msra.mxu1 %v347_v18  ;;  %v440_v25 = vld [vmem:[%s1438_s3 + $0x60] sm:$0xff]  ;;  %v439_v29 = vld [vmem:[%s1438_s3 + $0x58] sm:$0xff]  ;;  %v344_v32 = vld [vmem:[%s1437_s2 + $0x50] sm:$0xff] }
  0x1c   : > { %275 = vmatpush.msra.mxu0 %v268_v13  ;;  %446 = vmatpush.msra.mxu2 %v441_v19  ;;  %v264_v26 = vld [vmem:[%s1436_s1 + $0x40] sm:$0xff]  ;;  %v263_v30 = vld [vmem:[%s1436_s1 + $0x38] sm:$0xff]  ;;  %v438_v33 = vld [vmem:[%s1438_s3 + $0x50] sm:$0xff]  ;;  %p908_p13 = pneg %p907_p12 }
  0x1d   : > { %569 = vmatpush.msra.mxu3 %v548_v22  ;;  %v547_v27 = vld [vmem:[%s1439_s4 + $0x60] sm:$0xff]  ;;  %353 = vmatpush.msra.mxu1 %v346_v24  ;;  %v546_v31 = vld [vmem:[%s1439_s4 + $0x58] sm:$0xff]  ;;  %v262_v34 = vld [vmem:[%s1436_s1 + $0x30] sm:$0xff] }
  0x1e   : > { %276 = vmatpush.msra.mxu0 %v267_v17  ;;  %447 = vmatpush.msra.mxu2 %v440_v25  ;;  %v545_v35 = vld [vmem:[%s1439_s4 + $0x50] sm:$0xff]  ;;  %v261_v36 = vld [vmem:[%s1436_s1 + $0x28] sm:$0xff]  ;;  %v260_v40 = vld [vmem:[%s1436_s1 + $0x20] sm:$0xff]  ;;  %v230_v17 = vlaneseq  ;;  %p913_p3 = pnand %p912_p2, %p908_p13 }
  0x1f   : > { %875 = vset.pattern.permute.xlu0 %v955_v2  ;;  %877 = vset.pattern.permute.xlu1 %v956_v5  ;;  %v343_v37 = vld [vmem:[%s1437_s2 + $0x48] sm:$0xff]  ;;  %v342_v41 = vld [vmem:[%s1437_s2 + $0x40] sm:$0xff]  ;;  %v259_v44 = vld [vmem:[%s1436_s1 + $0x18] sm:$0xff] }
  0x20   : > { %405 = vperm.xlu0 %875, %v494_v3   ;;  %311 = vperm.xlu1 %877, %v494_v3   ;;  %v437_v38 = vld [vmem:[%s1438_s3 + $0x48] sm:$0xff]  ;;  %v436_v42 = vld [vmem:[%s1438_s3 + $0x40] sm:$0xff]  ;;  %v341_v45 = vld [vmem:[%s1437_s2 + $0x38] sm:$0xff]  ;;  %v1295_v19 = vand.u32 127, %v230_v17 }
  0x21   : > { %879 = vset.pattern.permute.xlu2 %v953_v0  ;;  %277 = vmatpush.msra.mxu0 %v266_v21  ;;  %v544_v39 = vld [vmem:[%s1439_s4 + $0x48] sm:$0xff]  ;;  %v543_v43 = vld [vmem:[%s1439_s4 + $0x40] sm:$0xff]  ;;  %v435_v46 = vld [vmem:[%s1438_s3 + $0x38] sm:$0xff] }
  0x22   : > { %503 = vperm.xlu2 %879, %v227_v4   ;;  %570 = vmatpush.msra.mxu3 %v547_v27  ;;  %v542_v47 = vld [vmem:[%s1439_s4 + $0x38] sm:$0xff]  ;;  %v258_v48 = vld [vmem:[%s1436_s1 + $0x10] sm:$0xff]  ;;  %v257_v52 = vld [vmem:[%s1436_s1 + $0x8] sm:$0xff] }
  0x23   : > { %278 = vmatpush.msra.mxu0 %v265_v23  ;;  %354 = vmatpush.msra.mxu1 %v345_v28  ;;  %v340_v49 = vld [vmem:[%s1437_s2 + $0x30] sm:$0xff]  ;;  %v339_v53 = vld [vmem:[%s1437_s2 + $0x28] sm:$0xff]  ;;  %v256_v56 = vld [vmem:[%s1436_s1] sm:$0xff] }
  0x24   : > { %448 = vmatpush.msra.mxu2 %v439_v29  ;;  %571 = vmatpush.msra.mxu3 %v546_v31  ;;  %v434_v50 = vld [vmem:[%s1438_s3 + $0x30] sm:$0xff]  ;;  %v433_v54 = vld [vmem:[%s1438_s3 + $0x28] sm:$0xff]  ;;  %v338_v57 = vld [vmem:[%s1437_s2 + $0x20] sm:$0xff] }
  0x25   : > { %279 = vmatpush.msra.mxu0 %v264_v26  ;;  %355 = vmatpush.msra.mxu1 %v344_v32  ;;  %v541_v51 = vld [vmem:[%s1439_s4 + $0x30] sm:$0xff]  ;;  %v540_v55 = vld [vmem:[%s1439_s4 + $0x28] sm:$0xff]  ;;  %v432_v58 = vld [vmem:[%s1438_s3 + $0x20] sm:$0xff]  ;;  %v957_v26 = vmov 1.0  }
  0x26   : > { %449 = vmatpush.msra.mxu2 %v438_v33  ;;  %572 = vmatpush.msra.mxu3 %v545_v35  ;;  %v539_v59 = vld [vmem:[%s1439_s4 + $0x20] sm:$0xff]  ;;  %v337_v60 = vld [vmem:[%s1437_s2 + $0x18] sm:$0xff]  ;;  %v336_v63 = vld [vmem:[%s1437_s2 + $0x10] sm:$0xff] }
  0x27   : > { %280 = vmatpush.msra.mxu0 %v263_v30  ;;  %356 = vmatpush.msra.mxu1 %v343_v37  ;;  %v431_v61 = vld [vmem:[%s1438_s3 + $0x18] sm:$0xff]  ;;  %v429_v3 = vld [vmem:[%s1438_s3 + $0x8] sm:$0xff]  ;;  %v535_v7 = vld [vmem:[%s1439_s4] sm:$0xff] }
  0x28   : > { %880 = vset.pattern.permute.xlu1 %v954_v1  ;;  %411 = vperm.xlu0 %875, %v1054_v6   ;;  %v538_v62 = vld [vmem:[%s1439_s4 + $0x18] sm:$0xff]  ;;  %v565_v9 = vld [vmem:[%s1439_s4 + $0xf0] sm:$0xff]  ;;  %v564_v10 = vld [vmem:[%s1439_s4 + $0xe8] sm:$0xff] }
  0x29   : > { %236 = vperm.xlu1 %880, %v227_v4   ;;  %281 = vmatpush.msra.mxu0 %v262_v34  ;;  %v566_v8 = vld [vmem:[%s1439_s4 + $0xf8] sm:$0xff]  ;;  %v563_v11 = vld [vmem:[%s1439_s4 + $0xe0] sm:$0xff]  ;;  %v561_v14 = vld [vmem:[%s1439_s4 + $0xd0] sm:$0xff] }
  0x2a   : > { %881 = vset.pattern.permute.xlu2 %v956_v5  ;;  %450 = vmatpush.msra.mxu2 %v437_v38  ;;  %v562_v12 = vld [vmem:[%s1439_s4 + $0xd8] sm:$0xff]  ;;  %v560_v15 = vld [vmem:[%s1439_s4 + $0xc8] sm:$0xff]  ;;  %v559_v16 = vld [vmem:[%s1439_s4 + $0xc0] sm:$0xff] }
  0x2b   : > { %314 = vperm.xlu2 %881, %v227_v4   ;;  %282 = vmatpush.msra.mxu0 %v261_v36  ;;  %v536_v4 = vld [vmem:[%s1439_s4 + $0x8] sm:$0xff]  ;;  %v558_v18 = vld [vmem:[%s1439_s4 + $0xb8] sm:$0xff]  ;;  %v555_v25 = vld [vmem:[%s1439_s4 + $0xa0] sm:$0xff] }
  0x2c   : > { %573 = vmatpush.msra.mxu3 %v544_v39  ;;  %357 = vmatpush.msra.mxu1 %v342_v41  ;;  %v556_v21 = vld [vmem:[%s1439_s4 + $0xa8] sm:$0xff]  ;;  %v554_v27 = vld [vmem:[%s1439_s4 + $0x98] sm:$0xff]  ;;  %v553_v28 = vld [vmem:[%s1439_s4 + $0x90] sm:$0xff]  ;;  %v498_v41 = vadd.s32 128, %v1295_v19 }
  0x2d   : > { %283 = vmatpush.msra.mxu0 %v260_v40  ;;  %451 = vmatpush.msra.mxu2 %v436_v42  ;;  %v552_v29 = vld [vmem:[%s1439_s4 + $0x88] sm:$0xff]  ;;  %v551_v33 = vld [vmem:[%s1439_s4 + $0x80] sm:$0xff] }
  0x2e   : > { %574 = vmatpush.msra.mxu3 %v543_v43  ;;  %358 = vmatpush.msra.mxu1 %v341_v45 }
  0x2f   : > { %284 = vmatpush.msra.mxu0 %v259_v44  ;;  %452 = vmatpush.msra.mxu2 %v435_v46 }
  0x30   : > { %886 = vset.pattern.permute.xlu0 %v953_v0  ;;  %575 = vmatpush.msra.mxu3 %v542_v47 }
  0x31   : > { %882 = vset.pattern.permute.xlu1 %v953_v0  ;;  %509 = vperm.xlu0 %886, %v1099_v20   ;;  %v430_v0 = vld [vmem:[%s1438_s3 + $0x10] sm:$0xff] }
  0x32   : > { %506 = vperm.xlu1 %882, %v1054_v6   ;;  %285 = vmatpush.msra.mxu0 %v258_v48 }
  0x33   : > { %883 = vset.pattern.permute.xlu2 %v954_v1  ;;  %359 = vmatpush.msra.mxu1 %v340_v49 }
  0x34   : > { %239 = vperm.xlu2 %883, %v1054_v6   ;;  %453 = vmatpush.msra.mxu2 %v434_v50 }
  0x35   : > { %576 = vmatpush.msra.mxu3 %v541_v51  ;;  %286 = vmatpush.msra.mxu0 %v257_v52 }
  0x36   : > { %360 = vmatpush.msra.mxu1 %v339_v53  ;;  %454 = vmatpush.msra.mxu2 %v433_v54 }
  0x37   : > { %577 = vmatpush.msra.mxu3 %v540_v55  ;;  %287 = vmatpush.msra.mxu0 %v256_v56 }
  0x38   : > { %361 = vmatpush.msra.mxu1 %v338_v57  ;;  %455 = vmatpush.msra.mxu2 %v432_v58 }
  0x39   : > { %578 = vmatpush.msra.mxu3 %v539_v59  ;;  %596 = vmatpush.msrb.mxu0 %v566_v8 }
  0x3a   : > { %884 = vset.pattern.permute.xlu1 %v956_v5  ;;  %362 = vmatpush.msra.mxu1 %v337_v60 }
  0x3b   : > { %317 = vperm.xlu1 %884, %v1054_v6   ;;  %456 = vmatpush.msra.mxu2 %v431_v61  ;;  %v428_v6 = vld [vmem:[%s1438_s3] sm:$0xff] }
  0x3c   : > { %885 = vset.pattern.permute.xlu2 %v955_v2  ;;  %579 = vmatpush.msra.mxu3 %v538_v62  ;;  %v335_v2 = vld [vmem:[%s1437_s2 + $0x8] sm:$0xff] }
  0x3d   : > { %414 = vperm.xlu2 %885, %v1099_v20   ;;  %363 = vmatpush.msra.mxu1 %v336_v63 }
  0x3e   : > { %457 = vmatpush.msra.mxu2 %v430_v0  ;;  %597 = vmatpush.msrb.mxu0 %v565_v9 }
  0x3f   : > { %364 = vmatpush.msra.mxu1 %v335_v2 }
  0x40   : > { %458 = vmatpush.msra.mxu2 %v429_v3  ;;  %598 = vmatpush.msrb.mxu0 %v564_v10 }
  0x42   : > { %459 = vmatpush.msra.mxu2 %v428_v6  ;;  %599 = vmatpush.msrb.mxu0 %v563_v11 }
  0x43   : > { %887 = vset.pattern.permute.xlu1 %v954_v1  ;;  %v537_v1 = vld [vmem:[%s1439_s4 + $0x10] sm:$0xff] }
  0x44   : > { %242 = vperm.xlu1 %887, %v1099_v20   ;;  %580 = vmatpush.msra.mxu3 %v537_v1 }
  0x45   : > { %888 = vset.pattern.permute.xlu2 %v956_v5  ;;  %v334_v5 = vld [vmem:[%s1437_s2] sm:$0xff]  ;;  %778 = vmatpush.msrb.mxu2 %v566_v8 }
  0x46   : > { %320 = vperm.xlu2 %888, %v1099_v20   ;;  %581 = vmatpush.msra.mxu3 %v536_v4  ;;  %v557_v20 = vld [vmem:[%s1439_s4 + $0xb0] sm:$0xff] }
  0x47   : > { %365 = vmatpush.msra.mxu1 %v334_v5  ;;  %781 = vmatpush.msrb.mxu2 %v565_v9 }
  0x48   : > { %582 = vmatpush.msra.mxu3 %v535_v7  ;;  %600 = vmatpush.msrb.mxu0 %v562_v12 }
  0x49   : > { %777 = vmatpush.msrb.mxu1 %v566_v8  ;;  %784 = vmatpush.msrb.mxu2 %v564_v10 }
  0x4a   : > { %779 = vmatpush.msrb.mxu3 %v566_v8  ;;  %601 = vmatpush.msrb.mxu0 %v561_v14 }
  0x4b   : > { %780 = vmatpush.msrb.mxu1 %v565_v9  ;;  %787 = vmatpush.msrb.mxu2 %v563_v11 }
  0x4c   : > { %782 = vmatpush.msrb.mxu3 %v565_v9  ;;  %602 = vmatpush.msrb.mxu0 %v560_v15 }
  0x4d   : > { %783 = vmatpush.msrb.mxu1 %v564_v10  ;;  %790 = vmatpush.msrb.mxu2 %v562_v12 }
  0x4e   : > { %785 = vmatpush.msrb.mxu3 %v564_v10  ;;  %603 = vmatpush.msrb.mxu0 %v559_v16 }
  0x4f   : > { %786 = vmatpush.msrb.mxu1 %v563_v11  ;;  %793 = vmatpush.msrb.mxu2 %v561_v14 }
  0x50   : > { %788 = vmatpush.msrb.mxu3 %v563_v11  ;;  %604 = vmatpush.msrb.mxu0 %v558_v18 }
  0x51   : > { %789 = vmatpush.msrb.mxu1 %v562_v12  ;;  %796 = vmatpush.msrb.mxu2 %v560_v15 }
  0x52   : > { %791 = vmatpush.msrb.mxu3 %v562_v12  ;;  %605 = vmatpush.msrb.mxu0 %v557_v20 }
  0x53   : > { %792 = vmatpush.msrb.mxu1 %v561_v14  ;;  %799 = vmatpush.msrb.mxu2 %v559_v16 }
  0x54   : > { %794 = vmatpush.msrb.mxu3 %v561_v14  ;;  %606 = vmatpush.msrb.mxu0 %v556_v21 }
  0x55   : > { %795 = vmatpush.msrb.mxu1 %v560_v15  ;;  %802 = vmatpush.msrb.mxu2 %v558_v18 }
  0x56   : > { %797 = vmatpush.msrb.mxu3 %v560_v15  ;;  %607 = vmatpush.msrb.mxu0 %v555_v25 }
  0x57   : > { %798 = vmatpush.msrb.mxu1 %v559_v16  ;;  %805 = vmatpush.msrb.mxu2 %v557_v20 }
  0x58   : > { %800 = vmatpush.msrb.mxu3 %v559_v16  ;;  %608 = vmatpush.msrb.mxu0 %v554_v27 }
  0x59   : > { %801 = vmatpush.msrb.mxu1 %v558_v18  ;;  %808 = vmatpush.msrb.mxu2 %v556_v21 }
  0x5a   : > { %803 = vmatpush.msrb.mxu3 %v558_v18  ;;  %609 = vmatpush.msrb.mxu0 %v553_v28 }
  0x5b   : > { %804 = vmatpush.msrb.mxu1 %v557_v20  ;;  %811 = vmatpush.msrb.mxu2 %v555_v25 }
  0x5c   : > { %806 = vmatpush.msrb.mxu3 %v557_v20  ;;  %610 = vmatpush.msrb.mxu0 %v552_v29 }
  0x5d   : > { %807 = vmatpush.msrb.mxu1 %v556_v21  ;;  %814 = vmatpush.msrb.mxu2 %v554_v27 }
  0x5e   : > { %809 = vmatpush.msrb.mxu3 %v556_v21  ;;  %611 = vmatpush.msrb.mxu0 %v551_v33 }
  0x5f   : > { %810 = vmatpush.msrb.mxu1 %v555_v25  ;;  %817 = vmatpush.msrb.mxu2 %v553_v28 }
  0x60   : > { %812 = vmatpush.msrb.mxu3 %v555_v25 }
  0x61   : > { %813 = vmatpush.msrb.mxu1 %v554_v27  ;;  %820 = vmatpush.msrb.mxu2 %v552_v29 }
  0x62   : > { %815 = vmatpush.msrb.mxu3 %v554_v27 }
  0x63   : > { %816 = vmatpush.msrb.mxu1 %v553_v28  ;;  %823 = vmatpush.msrb.mxu2 %v551_v33 }
  0x64   : > { %818 = vmatpush.msrb.mxu3 %v553_v28 }
  0x65   : > { %819 = vmatpush.msrb.mxu1 %v552_v29 }
  0x66   : > { %821 = vmatpush.msrb.mxu3 %v552_v29 }
  0x67   : > { %822 = vmatpush.msrb.mxu1 %v551_v33 }
  0x68   : > { %824 = vmatpush.msrb.mxu3 %v551_v33 }
  0x72   : > { %v1281_v13 = vpop.permute.xlu2 %408 }
  0x73   : > { %vm417_vm6 = vcmp.eq.s32.totalorder %v1295_v19, %v1281_v13 }
  0x7c   : > { %v1303_v22 = vpop.permute.xlu2 %503 }
  0x7d   : > { %vm513_vm2 = vcmp.eq.s32.totalorder %v1295_v19, %v1303_v22 }
  0x85   : > { %v315_v30 = vpop.permute.xlu2 %314 }
  0x86   : > { %vm323_vm5 = vcmp.eq.s32.totalorder %v1295_v19, %v315_v30 }
  0x89   : > { %v234_v23 = vpop.permute.xlu1 %233  ;;  %v1305_v24 = vpop.permute.xlu0 %500 }
  0x8a   : > { %vm244_vm0 = vcmp.eq.s32.totalorder %v1295_v19, %v234_v23  ;;  %vm511_vm1 = vcmp.eq.s32.totalorder %v1295_v19, %v1305_v24 }
  0x8b   : > { %735 = vmatmul.msk.f32.vlgmr.msra.gmra.mxu0 %vm244_vm0, %v957_v26  ;;  %763 = vmatmul.msk.f32.vlgmr.msra.gmra.mxu3 %vm511_vm1, %v957_v26 }
  0x8e   : > { %v240_v35 = vpop.permute.xlu2 %239 }
  0x8f   : > { %vm246_vm9 = vcmp.eq.s32.totalorder %v1295_v19, %v240_v35 }
  0x92   : > { %v406_v31 = vpop.permute.xlu0 %405  ;;  %v312_v32 = vpop.permute.xlu1 %311 }
  0x93   : > { %vm416_vm3 = vcmp.eq.s32.totalorder %v1295_v19, %v406_v31  ;;  %vm322_vm4 = vcmp.eq.s32.totalorder %v1295_v19, %v312_v32  ;;  %764 = vmatmul.msk.f32.gmra.mxu3 %vm513_vm2, %v957_v26  ;;  %vm514_vm2 = vcmp.eq.s32.totalorder %v498_v41, %v1303_v22 }
  0x94   : > { %743 = vmatmul.msk.f32.vlgmr.msra.gmra.mxu1 %vm322_vm4, %v957_v26  ;;  %751 = vmatmul.msk.f32.vlgmr.msra.gmra.mxu2 %vm416_vm3, %v957_v26  ;;  %vm512_vm3 = vcmp.eq.s32.totalorder %v498_v41, %v1305_v24  ;;  %vm301_vm4 = vcmask 261120  }
  0x97   : > { %v415_v38 = vpop.permute.xlu2 %414 }
  0x98   : > { %vm419_vm11 = vcmp.eq.s32.totalorder %v1295_v19, %v415_v38 }
  0x9a   : > { %v412_v36 = vpop.permute.xlu0 %411 }
  0x9b   : > { %v237_v34 = vpop.permute.xlu1 %236  ;;  %vm418_vm8 = vcmp.eq.s32.totalorder %v1295_v19, %v412_v36 }
  0x9c   : > { %vm245_vm7 = vcmp.eq.s32.totalorder %v1295_v19, %v237_v34  ;;  %752 = vmatmul.msk.f32.gmra.mxu2 %vm417_vm6, %v957_v26  ;;  %744 = vmatmul.msk.f32.gmra.mxu1 %vm323_vm5, %v957_v26  ;;  %vm395_vm5 = vcmask 523520   ;;  %vm489_vm6 = vcmask 785920  }
  0x9d   : > { %736 = vmatmul.msk.f32.gmra.mxu0 %vm245_vm7, %v957_v26  ;;  %vm641_vm7 = vcmask 1048320  }
  0xa0   : > { %v321_v42 = vpop.permute.xlu2 %320 }
  0xa1   : > { %vm325_vm0 = vcmp.eq.s32.totalorder %v1295_v19, %v321_v42 }
  0xa3   : > { %v510_v39 = vpop.permute.xlu0 %509 }
  0xa4   : > { %753 = vmatmul.msk.f32.gmra.mxu2 %vm418_vm8, %v957_v26  ;;  %v507_v37 = vpop.permute.xlu1 %506  ;;  %vm517_vm12 = vcmp.eq.s32.totalorder %v1295_v19, %v510_v39  ;;  %vm518_vm15 = vcmp.eq.s32.totalorder %v498_v41, %v510_v39 }
  0xa5   : > { %vm515_vm10 = vcmp.eq.s32.totalorder %v1295_v19, %v507_v37  ;;  %737 = vmatmul.msk.f32.gmra.mxu0 %vm246_vm9, %v957_v26  ;;  %vm516_vm14 = vcmp.eq.s32.totalorder %v498_v41, %v507_v37 }
  0xa6   : > { %765 = vmatmul.msk.f32.gmra.mxu3 %vm515_vm10, %v957_v26 }
  0xac   : > { %754 = vmatmul.msk.f32.gmra.mxu2 %vm419_vm11, %v957_v26 }
  0xad   : > { %v318_v40 = vpop.permute.xlu1 %317 }
  0xae   : > { %vm324_vm13 = vcmp.eq.s32.totalorder %v1295_v19, %v318_v40  ;;  %766 = vmatmul.msk.f32.gmra.mxu3 %vm517_vm12, %v957_v26 }
  0xaf   : > { %745 = vmatmul.msk.f32.gmra.mxu1 %vm324_vm13, %v957_v26 }
  0xb4   : > { %769 = vmatmul.msk.f32.vlgmr.msrb.gmra.mxu2 %vm516_vm14, %v957_v26 }
  0xb6   : > { %v243_v43 = vpop.permute.xlu1 %242  ;;  %770 = vmatmul.msk.f32.vlgmr.msrb.gmra.mxu3 %vm518_vm15, %v957_v26 }
  0xb7   : > { %vm247_vm1 = vcmp.eq.s32.totalorder %v1295_v19, %v243_v43  ;;  %746 = vmatmul.msk.f32.gmra.mxu1 %vm325_vm0, %v957_v26 }
  0xb8   : > { %738 = vmatmul.msk.f32.gmra.mxu0 %vm247_vm1, %v957_v26 }
  0xbf   : > { %768 = vmatmul.msk.f32.vlgmr.msrb.gmra.mxu1 %vm514_vm2, %v957_v26 }
  0xc0   : > { %767 = vmatmul.msk.f32.vlgmr.msrb.gmra.mxu0 %vm512_vm3, %v957_v26 }
 0x108   : > { %v289_v44 = vpop.f32.mrf.mxu0 }
 0x109   : > { %302 = vst.msk [vmem:[%s1367_s13] sm:$0xff] %vm301_vm4, %v289_v44 }
 0x10e   : > { %v584_v49 = vpop.f32.mrf.mxu3 }
 0x111   : > { %v367_v45 = vpop.f32.mrf.mxu1 }
 0x112   : > { %383 = vrot.lane.b32.xlu1 %v367_v45, %s958_s14 }
 0x116   : > { %v587_v53 = vpop.f32.mrf.mxu3 }
 0x117   : > { %v461_v46 = vpop.f32.mrf.mxu2 }
 0x118   : > { %477 = vrot.lane.b32.xlu2 %v461_v46, %s959_s15 }
 0x119   : > { %v370_v48 = vpop.f32.mrf.mxu1 }
 0x11a   : > { %v292_v47 = vpop.f32.mrf.mxu0 }
 0x11b   : > { %303 = vst.msk [vmem:[%s1367_s13 + $0x8] sm:$0xff] %vm301_vm4, %v292_v47 }
 0x11f   : > { %v464_v50 = vpop.f32.mrf.mxu2 }
 0x120   : > { %479 = vrot.lane.b32.xlu0 %v464_v50, %s959_s15  ;;  %385 = vrot.lane.b32.xlu2 %v370_v48, %s958_s14 }
 0x122   : > { %v295_v51 = vpop.f32.mrf.mxu0 }
 0x123   : > { %304 = vst.msk [vmem:[%s1367_s13 + $0x10] sm:$0xff] %vm301_vm4, %v295_v51 }
 0x127   : > { %v467_v52 = vpop.f32.mrf.mxu2 }
 0x128   : > { %481 = vrot.lane.b32.xlu1 %v467_v52, %s959_s15 }
 0x129   : > { %v590_v56 = vpop.f32.mrf.mxu3 }
 0x12c   : > { %v373_v54 = vpop.f32.mrf.mxu1 }
 0x12d   : > { %387 = vrot.lane.b32.xlu0 %v373_v54, %s958_s14 }
 0x12f   : > { %v470_v55 = vpop.f32.mrf.mxu2 }
 0x130   : > { %483 = vrot.lane.b32.xlu2 %v470_v55, %s959_s15 }
 0x131   : > { %v593_v61 = vpop.f32.mrf.mxu3 }
 0x134   : > { %v376_v57 = vpop.f32.mrf.mxu1 }
 0x135   : > { %389 = vrot.lane.b32.xlu1 %v376_v57, %s958_s14  ;;  %v298_v58 = vpop.f32.mrf.mxu0 }
 0x136   : > { %305 = vst.msk [vmem:[%s1367_s13 + $0x18] sm:$0xff] %vm301_vm4, %v298_v58 }
 0x137   : > { %v619_v59 = vpop.f32.mrf.mxu2 }
 0x138   : > { %v620_v60 = vadd.f32 %v619_v59, %v590_v56 }
 0x139   : > { %v622_v2 = vpop.f32.mrf.mxu3 }
 0x13a   : > { %633 = vrot.lane.b32.xlu2 %v620_v60, %s960_s16  ;;  %v623_v3 = vadd.f32 %v622_v2, %v593_v61 }
 0x13c   : > { %v616_v62 = vpop.f32.mrf.mxu1 }
 0x13d   : > { %v617_v63 = vadd.f32 %v616_v62, %v587_v53  ;;  %v613_v0 = vpop.f32.mrf.mxu0 }
 0x13e   : > { %v614_v1 = vadd.f32 %v613_v0, %v584_v49 }
 0x13f   : > { %631 = vrot.lane.b32.xlu1 %v617_v63, %s960_s16 }
 0x140   : > { %629 = vrot.lane.b32.xlu0 %v614_v1, %s960_s16 }
 0x148   : > { %635 = vrot.lane.b32.xlu0 %v623_v3, %s960_s16 }
 0x172   : > { %v478_v4 = vpop.permute.xlu2 %477 }
 0x17a   : > { %v386_v5 = vpop.permute.xlu2 %385 }
 0x17b   : > { %397 = vst.msk [vmem:[%s1367_s13 + $0x8] sm:$0xff] %vm395_vm5, %v386_v5 }
 0x184   : > { %v384_v6 = vpop.permute.xlu1 %383 }
 0x185   : > { %396 = vst.msk [vmem:[%s1367_s13] sm:$0xff] %vm395_vm5, %v384_v6 }
 0x186   : > { %490 = vst.msk [vmem:[%s1367_s13] sm:$0xff] %vm489_vm6, %v478_v4 }
 0x18a   : > { %v484_v8 = vpop.permute.xlu2 %483 }
 0x192   : > { %v480_v7 = vpop.permute.xlu0 %479 }
 0x193   : > { %491 = vst.msk [vmem:[%s1367_s13 + $0x8] sm:$0xff] %vm489_vm6, %v480_v7 }
 0x194   : > { %v634_v11 = vpop.permute.xlu2 %633 }
 0x19a   : > { %v482_v9 = vpop.permute.xlu1 %481 }
 0x19f   : > { %v388_v10 = vpop.permute.xlu0 %387 }
 0x1a0   : > { %398 = vst.msk [vmem:[%s1367_s13 + $0x10] sm:$0xff] %vm395_vm5, %v388_v10 }
 0x1a1   : > { %492 = vst.msk [vmem:[%s1367_s13 + $0x10] sm:$0xff] %vm489_vm6, %v482_v9 }
 0x1a2   : > { %644 = vst.msk [vmem:[%s1367_s13 + $0x10] sm:$0xff] %vm641_vm7, %v634_v11 }
 0x1a7   : > { %v390_v12 = vpop.permute.xlu1 %389 }
 0x1a8   : > { %399 = vst.msk [vmem:[%s1367_s13 + $0x18] sm:$0xff] %vm395_vm5, %v390_v12 }
 0x1a9   : > { %493 = vst.msk [vmem:[%s1367_s13 + $0x18] sm:$0xff] %vm489_vm6, %v484_v8 }
 0x1b1   : > { %v632_v13 = vpop.permute.xlu1 %631 }
 0x1b2   : > { %643 = vst.msk [vmem:[%s1367_s13 + $0x8] sm:$0xff] %vm641_vm7, %v632_v13  ;;  %v630_v14 = vpop.permute.xlu0 %629 }
 0x1b3   : > { %642 = vst.msk [vmem:[%s1367_s13] sm:$0xff] %vm641_vm7, %v630_v14 }
 0x1ba   : > { %v636_v15 = vpop.permute.xlu0 %635 }
 0x1bb   : > { %645 = vst.msk [vmem:[%s1367_s13 + $0x18] sm:$0xff] %vm641_vm7, %v636_v15 }
 0x1bc   : > { %916 = shalt.err (!%p913_p3)
}
 0x1bd   : > { %s961_s11 = smov 128   ;;  %s962_s13 = smov 8  }
 0x1be   : > { %825 = dma.vmem_to_hbm [thread:$0]  (%p1031_p5), %s660_s30, 512, %s662_s6, %s647_s22, %s961_s11, %s961_s11, %s962_s13  }
 0x1bf PF: > { %p831_p4 = scmp.ge.s32.totalorder %s951_s21, 2  ;;  %s676_s16 = sand.u32 1, %s939_s18  }
 0x1c0   : > { %s677_s17 = scalar_lea.sflag [#allocation3], %s676_s16 }
 0x1c1   : > { %p828_p7 = pnand %p831_p4, %p1035_p6 }
 0x1c3   : > { %p829_p8 = pneg %p828_p7 }
 0x1c5   : > { %934 = dma.done.wait (%p829_p8), %s677_s17, 512  }
 0x1c6   : > { %936 = vsyncadd (%p829_p8), %s677_s17, 4294966784  ;;  %p15_p9 = scmp.ge.s32.totalorder %s1018_s24, 4   ;;  %s1443_s18 = smov %s943_s19 }
 0x1c7   : > { %s1444_s19 = smov %s947_s20  ;;  %s1445_s20 = smov %s1029_s27 }
 0x1c8   : > { %s1446_s21 = smov %s1018_s24  ;;  %17 = sbr.rel (!%p15_p9) target bundleno = 3 (0x3), region = 75 }
 0x1cd   :  { %683 = vsyncpa [#allocation3], 1 }
 0x1ce   :  { %685 = vsyncpa [#allocation3 + $0x1], 1 }

</bundles_post_ra>
